<compile_context>
chip_gen: v7x
topology: tpu7x:2x2x1
jax: 0.10.0
libtpu: 0.0.40
codegen_flags: <defaults>
</compile_context>

<pallas_src>
import functools

import jax
import jax.numpy as jnp
from jax.experimental import pallas as pl
from jax.experimental.pallas import tpu as pltpu


# ----------------------------- fused Pallas kernel ---------------------------

def _book_trade_kernel(
    books_ref, trades_ref,
    # books BaseModel
    bw0, bb0, bw1, bb1, bw2, bb2,
    # trades BaseModel
    tw0, tb0, tw1, tb1, tw2, tb2,
    # head: fc0 (split-K), context gate, fc
    fc0_wb, fc0_wt, fc0_b,
    g1_w, g1_b, g2_w, g2_b,
    fc_w, fc_b,
    o_ref,
):
    def mlp(x, w0, b0, w1, b1, w2, b2):
        h = jnp.dot(x, w0[...], preferred_element_type=jnp.float32) + b0[...]
        h = jnp.maximum(h, 0.0)
        h = jnp.dot(h, w1[...], preferred_element_type=jnp.float32) + b1[...]
        h = jnp.maximum(h, 0.0)
        return jnp.dot(h, w2[...], preferred_element_type=jnp.float32) + b2[...]

    b = mlp(books_ref[...], bw0, bb0, bw1, bb1, bw2, bb2)
    t = mlp(trades_ref[...], tw0, tb0, tw1, tb1, tw2, tb2)

    # fc0 with split-K == concat([b, t], axis=1) @ fc0_w + fc0_bias, no concat.
    x = (jnp.dot(b, fc0_wb[...], preferred_element_type=jnp.float32)
         + jnp.dot(t, fc0_wt[...], preferred_element_type=jnp.float32)
         + fc0_b[...])
    # nn.Dropout(0) is the identity.

    # context_gate: Linear -> ReLU -> Linear -> Sigmoid
    g = jnp.dot(x, g1_w[...], preferred_element_type=jnp.float32) + g1_b[...]
    g = jnp.maximum(g, 0.0)
    g = jnp.dot(g, g2_w[...], preferred_element_type=jnp.float32) + g2_b[...]
    g = jax.nn.sigmoid(g)
    x = x * g

    # Final fc to a single output: VPU multiply + lane reduction instead of a
    # 1-column MXU matmul. fc_w is (1, 2*out_dim), fc_b is (1, 1).
    o_ref[...] = jnp.sum(x * fc_w[...], axis=-1, keepdims=True) + fc_b[...]


# ----------------------------- wrapper ---------------------------------------

def _const_spec(shape):
    ndim = len(shape)
    return pl.BlockSpec(shape, lambda i, _n=ndim: (0,) * _n)


@functools.partial(jax.jit, static_argnames=("tile_b",))
def book_trade_net_forward(books, trades, params, tile_b=512):
    B, in_dim = books.shape
    out_dim = params["books"]["w2"].shape[1]

    # Row tiling: single tile for small B; otherwise pad to a multiple of
    # tile_b (rows are independent, so zero-padding + slicing is exact).
    if B <= tile_b:
        tb, Bp = B, B
    else:
        tb = tile_b
        Bp = ((B + tb - 1) // tb) * tb
        if Bp != B:
            pad = Bp - B
            books = jnp.pad(books, ((0, pad), (0, 0)))
            trades = jnp.pad(trades, ((0, pad), (0, 0)))

    pb, pt, ph = params["books"], params["trades"], params["head"]
    # Split fc0 weight along K for the concat-free head.
    fc0_wb = ph["fc0_w"][:out_dim, :]
    fc0_wt = ph["fc0_w"][out_dim:, :]

    weight_args = (
        pb["w0"], pb["b0"], pb["w1"], pb["b1"], pb["w2"], pb["b2"],
        pt["w0"], pt["b0"], pt["w1"], pt["b1"], pt["w2"], pt["b2"],
        fc0_wb, fc0_wt, ph["fc0_b"],
        ph["g1_w"], ph["g1_b"], ph["g2_w"], ph["g2_b"],
        ph["fc_w"], ph["fc_b"],
    )

    act_spec = pl.BlockSpec((tb, in_dim), lambda i: (i, 0))
    out = pl.pallas_call(
        _book_trade_kernel,
        out_shape=jax.ShapeDtypeStruct((Bp, 1), jnp.float32),
        grid=(Bp // tb,),
        in_specs=[act_spec, act_spec] + [_const_spec(w.shape) for w in weight_args],
        out_specs=pl.BlockSpec((tb, 1), lambda i: (i, 0)),
        compiler_params=pltpu.CompilerParams(
            dimension_semantics=("parallel",),   # megacore split on v7x; neutral on v5e/v6e
        ),
    )(books, trades, *weight_args)

    return out[:B] if Bp != B else out


# ----------------------------- params ----------------------------------------

def _init_linear(key, in_dim, out_dim):
    kw, kb = jax.random.split(key)
    bound = 1.0 / (in_dim ** 0.5)
    w = jax.random.uniform(kw, (in_dim, out_dim), jnp.float32, -bound, bound)
    b = jax.random.uniform(kb, (1, out_dim), jnp.float32, -bound, bound)
    return w, b


def init_params(key, input_dim, output_dim, hidden_dim=64, num_layers=2):
    assert num_layers == 2  # kernel is specialized to num_layers=2
    keys = jax.random.split(key, 10)

    def base(k0, k1, k2):
        w0, b0 = _init_linear(k0, input_dim, hidden_dim)
        w1, b1 = _init_linear(k1, hidden_dim, hidden_dim)
        w2, b2 = _init_linear(k2, hidden_dim, output_dim)
        return dict(w0=w0, b0=b0, w1=w1, b1=b1, w2=w2, b2=b2)

    fc0_w, fc0_b = _init_linear(keys[6], output_dim * 2, output_dim * 2)
    g1_w, g1_b = _init_linear(keys[7], output_dim * 2, output_dim // 4)
    g2_w, g2_b = _init_linear(keys[8], output_dim // 4, output_dim * 2)
    fc_wT, fc_b = _init_linear(keys[9], output_dim * 2, 1)
    fc_w = fc_wT.T  # stored as (1, 2*out_dim) for the VPU-reduce final layer

    return dict(
        books=base(keys[0], keys[1], keys[2]),
        trades=base(keys[3], keys[4], keys[5]),
        head=dict(fc0_w=fc0_w, fc0_b=fc0_b, g1_w=g1_w, g1_b=g1_b,
                  g2_w=g2_w, g2_b=g2_b, fc_w=fc_w, fc_b=fc_b),
    )


# ----------------------------- reference (pure JAX) ---------------------------

def _ref_forward(books, trades, params):
    def base(x, p):
        h = jnp.maximum(x @ p["w0"] + p["b0"], 0.0)
        h = jnp.maximum(h @ p["w1"] + p["b1"], 0.0)
        return h @ p["w2"] + p["b2"]

    b = base(books, params["books"])
    t = base(trades, params["trades"])
    x = jnp.concatenate([b, t], axis=1)
    p = params["head"]
    x = x @ p["fc0_w"] + p["fc0_b"]
    g = jnp.maximum(x @ p["g1_w"] + p["g1_b"], 0.0)
    g = jax.nn.sigmoid(g @ p["g2_w"] + p["g2_b"])
    x = x * g
    return x @ p["fc_w"].T + p["fc_b"]


# ----------------------------- main -------------------------------------------

if __name__ == "__main__":
    B, INPUT_DIM, OUTPUT_DIM, HIDDEN_DIM = 8, 32, 32, 64

    key = jax.random.PRNGKey(0)
    kp, kb, kt = jax.random.split(key, 3)
    params = init_params(kp, INPUT_DIM, OUTPUT_DIM, HIDDEN_DIM, num_layers=2)

    books = jax.random.normal(kb, (B, INPUT_DIM), jnp.float32)
    trades = jax.random.normal(kt, (B, INPUT_DIM), jnp.float32)

    out = jax.block_until_ready(book_trade_net_forward(books, trades, params))
    ref = _ref_forward(books, trades, params)
    assert out.shape == (B, 1)
    assert jnp.allclose(out, ref, atol=1e-4, rtol=1e-4)

    # Also exercise the row-tiled grid path (pads 1040 -> 1536, 3 grid steps).
    B2 = 1040
    kb2, kt2 = jax.random.split(jax.random.PRNGKey(1))
    books2 = jax.random.normal(kb2, (B2, INPUT_DIM), jnp.float32)
    trades2 = jax.random.normal(kt2, (B2, INPUT_DIM), jnp.float32)
    out2 = jax.block_until_ready(book_trade_net_forward(books2, trades2, params))
    ref2 = _ref_forward(books2, trades2, params)
    assert out2.shape == (B2, 1)
    assert jnp.allclose(out2, ref2, atol=1e-4, rtol=1e-4)

    print("KERNEL_OK")
</pallas_src>

<mosaic_0001>
module attributes {stable_mosaic.version = 11 : i64} {
  func.func @_book_trade_kernel(%arg0: i32, %arg1: memref<8x32xf32, #tpu.memory_space<vmem>>, %arg2: memref<8x32xf32, #tpu.memory_space<vmem>>, %arg3: memref<32x64xf32, #tpu.memory_space<vmem>>, %arg4: memref<1x64xf32, #tpu.memory_space<vmem>>, %arg5: memref<64x64xf32, #tpu.memory_space<vmem>>, %arg6: memref<1x64xf32, #tpu.memory_space<vmem>>, %arg7: memref<64x32xf32, #tpu.memory_space<vmem>>, %arg8: memref<1x32xf32, #tpu.memory_space<vmem>>, %arg9: memref<32x64xf32, #tpu.memory_space<vmem>>, %arg10: memref<1x64xf32, #tpu.memory_space<vmem>>, %arg11: memref<64x64xf32, #tpu.memory_space<vmem>>, %arg12: memref<1x64xf32, #tpu.memory_space<vmem>>, %arg13: memref<64x32xf32, #tpu.memory_space<vmem>>, %arg14: memref<1x32xf32, #tpu.memory_space<vmem>>, %arg15: memref<32x64xf32, #tpu.memory_space<vmem>>, %arg16: memref<32x64xf32, #tpu.memory_space<vmem>>, %arg17: memref<1x64xf32, #tpu.memory_space<vmem>>, %arg18: memref<64x8xf32, #tpu.memory_space<vmem>>, %arg19: memref<1x8xf32, #tpu.memory_space<vmem>>, %arg20: memref<8x64xf32, #tpu.memory_space<vmem>>, %arg21: memref<1x64xf32, #tpu.memory_space<vmem>>, %arg22: memref<1x64xf32, #tpu.memory_space<vmem>>, %arg23: memref<1x1xf32, #tpu.memory_space<vmem>>, %arg24: memref<8x1xf32, #tpu.memory_space<vmem>>) attributes {dimension_semantics = [#tpu.dimension_semantics<parallel>], iteration_bounds = array<i64: 1>, scalar_prefetch = 0 : i64, scratch_operands = 0 : i64, tpu.core_type = #tpu.core_type<tc>, window_params = [{transform_indices = @transform_0, window_bounds = array<i64: 8, 32>}, {transform_indices = @transform_1, window_bounds = array<i64: 8, 32>}, {pipeline_mode = #tpu.pipeline_mode<synchronous>, transform_indices = @transform_2, window_bounds = array<i64: 32, 64>}, {pipeline_mode = #tpu.pipeline_mode<synchronous>, transform_indices = @transform_3, window_bounds = array<i64: 1, 64>}, {pipeline_mode = #tpu.pipeline_mode<synchronous>, transform_indices = @transform_4, window_bounds = array<i64: 64, 64>}, {pipeline_mode = #tpu.pipeline_mode<synchronous>, transform_indices = @transform_5, window_bounds = array<i64: 1, 64>}, {pipeline_mode = #tpu.pipeline_mode<synchronous>, transform_indices = @transform_6, window_bounds = array<i64: 64, 32>}, {pipeline_mode = #tpu.pipeline_mode<synchronous>, transform_indices = @transform_7, window_bounds = array<i64: 1, 32>}, {pipeline_mode = #tpu.pipeline_mode<synchronous>, transform_indices = @transform_8, window_bounds = array<i64: 32, 64>}, {pipeline_mode = #tpu.pipeline_mode<synchronous>, transform_indices = @transform_9, window_bounds = array<i64: 1, 64>}, {pipeline_mode = #tpu.pipeline_mode<synchronous>, transform_indices = @transform_10, window_bounds = array<i64: 64, 64>}, {pipeline_mode = #tpu.pipeline_mode<synchronous>, transform_indices = @transform_11, window_bounds = array<i64: 1, 64>}, {pipeline_mode = #tpu.pipeline_mode<synchronous>, transform_indices = @transform_12, window_bounds = array<i64: 64, 32>}, {pipeline_mode = #tpu.pipeline_mode<synchronous>, transform_indices = @transform_13, window_bounds = array<i64: 1, 32>}, {pipeline_mode = #tpu.pipeline_mode<synchronous>, transform_indices = @transform_14, window_bounds = array<i64: 32, 64>}, {pipeline_mode = #tpu.pipeline_mode<synchronous>, transform_indices = @transform_15, window_bounds = array<i64: 32, 64>}, {pipeline_mode = #tpu.pipeline_mode<synchronous>, transform_indices = @transform_16, window_bounds = array<i64: 1, 64>}, {pipeline_mode = #tpu.pipeline_mode<synchronous>, transform_indices = @transform_17, window_bounds = array<i64: 64, 8>}, {pipeline_mode = #tpu.pipeline_mode<synchronous>, transform_indices = @transform_18, window_bounds = array<i64: 1, 8>}, {pipeline_mode = #tpu.pipeline_mode<synchronous>, transform_indices = @transform_19, window_bounds = array<i64: 8, 64>}, {pipeline_mode = #tpu.pipeline_mode<synchronous>, transform_indices = @transform_20, window_bounds = array<i64: 1, 64>}, {pipeline_mode = #tpu.pipeline_mode<synchronous>, transform_indices = @transform_21, window_bounds = array<i64: 1, 64>}, {pipeline_mode = #tpu.pipeline_mode<synchronous>, transform_indices = @transform_22, window_bounds = array<i64: 1, 1>}, {transform_indices = @transform_23, window_bounds = array<i64: 8, 1>}]} {
    %c0 = arith.constant 0 : index
    %c0_0 = arith.constant 0 : index
    %0 = vector.load %arg1[%c0, %c0_0] : memref<8x32xf32, #tpu.memory_space<vmem>>, vector<8x32xf32>
    %c0_1 = arith.constant 0 : index
    %c0_2 = arith.constant 0 : index
    %1 = vector.load %arg3[%c0_1, %c0_2] : memref<32x64xf32, #tpu.memory_space<vmem>>, vector<32x64xf32>
    %cst = arith.constant dense<0.000000e+00> : vector<8x64xf32>
    %2 = tpu.matmul %0, %1, %cst {dimension_numbers = #tpu.dot_dimension_numbers<[1], [0], [0], [1], [0, 0, 1, 1], [], []>} : vector<8x32xf32>, vector<32x64xf32>, vector<8x64xf32> -> vector<8x64xf32>
    %c0_3 = arith.constant 0 : index
    %c0_4 = arith.constant 0 : index
    %3 = vector.load %arg4[%c0_3, %c0_4] : memref<1x64xf32, #tpu.memory_space<vmem>>, vector<1x64xf32>
    %4 = vector.broadcast %3 : vector<1x64xf32> to vector<8x64xf32>
    %5 = arith.addf %2, %4 : vector<8x64xf32>
    %cst_5 = arith.constant 0.000000e+00 : f32
    %6 = vector.broadcast %cst_5 : f32 to vector<8x64xf32>
    %7 = arith.maximumf %5, %6 : vector<8x64xf32>
    %c0_6 = arith.constant 0 : index
    %c0_7 = arith.constant 0 : index
    %8 = vector.load %arg5[%c0_6, %c0_7] : memref<64x64xf32, #tpu.memory_space<vmem>>, vector<64x64xf32>
    %cst_8 = arith.constant dense<0.000000e+00> : vector<8x64xf32>
    %9 = tpu.matmul %7, %8, %cst_8 {dimension_numbers = #tpu.dot_dimension_numbers<[1], [0], [0], [1], [0, 0, 1, 1], [], []>} : vector<8x64xf32>, vector<64x64xf32>, vector<8x64xf32> -> vector<8x64xf32>
    %c0_9 = arith.constant 0 : index
    %c0_10 = arith.constant 0 : index
    %10 = vector.load %arg6[%c0_9, %c0_10] : memref<1x64xf32, #tpu.memory_space<vmem>>, vector<1x64xf32>
    %11 = vector.broadcast %10 : vector<1x64xf32> to vector<8x64xf32>
    %12 = arith.addf %9, %11 : vector<8x64xf32>
    %cst_11 = arith.constant 0.000000e+00 : f32
    %13 = vector.broadcast %cst_11 : f32 to vector<8x64xf32>
    %14 = arith.maximumf %12, %13 : vector<8x64xf32>
    %c0_12 = arith.constant 0 : index
    %c0_13 = arith.constant 0 : index
    %15 = vector.load %arg7[%c0_12, %c0_13] : memref<64x32xf32, #tpu.memory_space<vmem>>, vector<64x32xf32>
    %cst_14 = arith.constant dense<0.000000e+00> : vector<8x32xf32>
    %16 = tpu.matmul %14, %15, %cst_14 {dimension_numbers = #tpu.dot_dimension_numbers<[1], [0], [0], [1], [0, 0, 1, 1], [], []>} : vector<8x64xf32>, vector<64x32xf32>, vector<8x32xf32> -> vector<8x32xf32>
    %c0_15 = arith.constant 0 : index
    %c0_16 = arith.constant 0 : index
    %17 = vector.load %arg8[%c0_15, %c0_16] : memref<1x32xf32, #tpu.memory_space<vmem>>, vector<1x32xf32>
    %18 = vector.broadcast %17 : vector<1x32xf32> to vector<8x32xf32>
    %19 = arith.addf %16, %18 : vector<8x32xf32>
    %c0_17 = arith.constant 0 : index
    %c0_18 = arith.constant 0 : index
    %20 = vector.load %arg2[%c0_17, %c0_18] : memref<8x32xf32, #tpu.memory_space<vmem>>, vector<8x32xf32>
    %c0_19 = arith.constant 0 : index
    %c0_20 = arith.constant 0 : index
    %21 = vector.load %arg9[%c0_19, %c0_20] : memref<32x64xf32, #tpu.memory_space<vmem>>, vector<32x64xf32>
    %cst_21 = arith.constant dense<0.000000e+00> : vector<8x64xf32>
    %22 = tpu.matmul %20, %21, %cst_21 {dimension_numbers = #tpu.dot_dimension_numbers<[1], [0], [0], [1], [0, 0, 1, 1], [], []>} : vector<8x32xf32>, vector<32x64xf32>, vector<8x64xf32> -> vector<8x64xf32>
    %c0_22 = arith.constant 0 : index
    %c0_23 = arith.constant 0 : index
    %23 = vector.load %arg10[%c0_22, %c0_23] : memref<1x64xf32, #tpu.memory_space<vmem>>, vector<1x64xf32>
    %24 = vector.broadcast %23 : vector<1x64xf32> to vector<8x64xf32>
    %25 = arith.addf %22, %24 : vector<8x64xf32>
    %cst_24 = arith.constant 0.000000e+00 : f32
    %26 = vector.broadcast %cst_24 : f32 to vector<8x64xf32>
    %27 = arith.maximumf %25, %26 : vector<8x64xf32>
    %c0_25 = arith.constant 0 : index
    %c0_26 = arith.constant 0 : index
    %28 = vector.load %arg11[%c0_25, %c0_26] : memref<64x64xf32, #tpu.memory_space<vmem>>, vector<64x64xf32>
    %cst_27 = arith.constant dense<0.000000e+00> : vector<8x64xf32>
    %29 = tpu.matmul %27, %28, %cst_27 {dimension_numbers = #tpu.dot_dimension_numbers<[1], [0], [0], [1], [0, 0, 1, 1], [], []>} : vector<8x64xf32>, vector<64x64xf32>, vector<8x64xf32> -> vector<8x64xf32>
    %c0_28 = arith.constant 0 : index
    %c0_29 = arith.constant 0 : index
    %30 = vector.load %arg12[%c0_28, %c0_29] : memref<1x64xf32, #tpu.memory_space<vmem>>, vector<1x64xf32>
    %31 = vector.broadcast %30 : vector<1x64xf32> to vector<8x64xf32>
    %32 = arith.addf %29, %31 : vector<8x64xf32>
    %cst_30 = arith.constant 0.000000e+00 : f32
    %33 = vector.broadcast %cst_30 : f32 to vector<8x64xf32>
    %34 = arith.maximumf %32, %33 : vector<8x64xf32>
    %c0_31 = arith.constant 0 : index
    %c0_32 = arith.constant 0 : index
    %35 = vector.load %arg13[%c0_31, %c0_32] : memref<64x32xf32, #tpu.memory_space<vmem>>, vector<64x32xf32>
    %cst_33 = arith.constant dense<0.000000e+00> : vector<8x32xf32>
    %36 = tpu.matmul %34, %35, %cst_33 {dimension_numbers = #tpu.dot_dimension_numbers<[1], [0], [0], [1], [0, 0, 1, 1], [], []>} : vector<8x64xf32>, vector<64x32xf32>, vector<8x32xf32> -> vector<8x32xf32>
    %c0_34 = arith.constant 0 : index
    %c0_35 = arith.constant 0 : index
    %37 = vector.load %arg14[%c0_34, %c0_35] : memref<1x32xf32, #tpu.memory_space<vmem>>, vector<1x32xf32>
    %38 = vector.broadcast %37 : vector<1x32xf32> to vector<8x32xf32>
    %39 = arith.addf %36, %38 : vector<8x32xf32>
    %c0_36 = arith.constant 0 : index
    %c0_37 = arith.constant 0 : index
    %40 = vector.load %arg15[%c0_36, %c0_37] : memref<32x64xf32, #tpu.memory_space<vmem>>, vector<32x64xf32>
    %cst_38 = arith.constant dense<0.000000e+00> : vector<8x64xf32>
    %41 = tpu.matmul %19, %40, %cst_38 {dimension_numbers = #tpu.dot_dimension_numbers<[1], [0], [0], [1], [0, 0, 1, 1], [], []>} : vector<8x32xf32>, vector<32x64xf32>, vector<8x64xf32> -> vector<8x64xf32>
    %c0_39 = arith.constant 0 : index
    %c0_40 = arith.constant 0 : index
    %42 = vector.load %arg16[%c0_39, %c0_40] : memref<32x64xf32, #tpu.memory_space<vmem>>, vector<32x64xf32>
    %cst_41 = arith.constant dense<0.000000e+00> : vector<8x64xf32>
    %43 = tpu.matmul %39, %42, %cst_41 {dimension_numbers = #tpu.dot_dimension_numbers<[1], [0], [0], [1], [0, 0, 1, 1], [], []>} : vector<8x32xf32>, vector<32x64xf32>, vector<8x64xf32> -> vector<8x64xf32>
    %44 = arith.addf %41, %43 : vector<8x64xf32>
    %c0_42 = arith.constant 0 : index
    %c0_43 = arith.constant 0 : index
    %45 = vector.load %arg17[%c0_42, %c0_43] : memref<1x64xf32, #tpu.memory_space<vmem>>, vector<1x64xf32>
    %46 = vector.broadcast %45 : vector<1x64xf32> to vector<8x64xf32>
    %47 = arith.addf %44, %46 : vector<8x64xf32>
    %c0_44 = arith.constant 0 : index
    %c0_45 = arith.constant 0 : index
    %48 = vector.load %arg18[%c0_44, %c0_45] : memref<64x8xf32, #tpu.memory_space<vmem>>, vector<64x8xf32>
    %cst_46 = arith.constant dense<0.000000e+00> : vector<8x8xf32>
    %49 = tpu.matmul %47, %48, %cst_46 {dimension_numbers = #tpu.dot_dimension_numbers<[1], [0], [0], [1], [0, 0, 1, 1], [], []>} : vector<8x64xf32>, vector<64x8xf32>, vector<8x8xf32> -> vector<8x8xf32>
    %c0_47 = arith.constant 0 : index
    %c0_48 = arith.constant 0 : index
    %50 = vector.load %arg19[%c0_47, %c0_48] : memref<1x8xf32, #tpu.memory_space<vmem>>, vector<1x8xf32>
    %51 = vector.broadcast %50 : vector<1x8xf32> to vector<8x8xf32>
    %52 = arith.addf %49, %51 : vector<8x8xf32>
    %cst_49 = arith.constant 0.000000e+00 : f32
    %53 = vector.broadcast %cst_49 : f32 to vector<8x8xf32>
    %54 = arith.maximumf %52, %53 : vector<8x8xf32>
    %c0_50 = arith.constant 0 : index
    %c0_51 = arith.constant 0 : index
    %55 = vector.load %arg20[%c0_50, %c0_51] : memref<8x64xf32, #tpu.memory_space<vmem>>, vector<8x64xf32>
    %cst_52 = arith.constant dense<0.000000e+00> : vector<8x64xf32>
    %56 = tpu.matmul %54, %55, %cst_52 {dimension_numbers = #tpu.dot_dimension_numbers<[1], [0], [0], [1], [0, 0, 1, 1], [], []>} : vector<8x8xf32>, vector<8x64xf32>, vector<8x64xf32> -> vector<8x64xf32>
    %c0_53 = arith.constant 0 : index
    %c0_54 = arith.constant 0 : index
    %57 = vector.load %arg21[%c0_53, %c0_54] : memref<1x64xf32, #tpu.memory_space<vmem>>, vector<1x64xf32>
    %58 = vector.broadcast %57 : vector<1x64xf32> to vector<8x64xf32>
    %59 = arith.addf %56, %58 : vector<8x64xf32>
    %60 = arith.negf %59 : vector<8x64xf32>
    %61 = math.exp %60 : vector<8x64xf32>
    %cst_55 = arith.constant 1.000000e+00 : f32
    %62 = vector.broadcast %cst_55 : f32 to vector<8x64xf32>
    %63 = arith.addf %62, %61 : vector<8x64xf32>
    %64 = arith.divf %62, %63 : vector<8x64xf32>
    %65 = arith.mulf %47, %64 : vector<8x64xf32>
    %c0_56 = arith.constant 0 : index
    %c0_57 = arith.constant 0 : index
    %66 = vector.load %arg22[%c0_56, %c0_57] : memref<1x64xf32, #tpu.memory_space<vmem>>, vector<1x64xf32>
    %67 = vector.broadcast %66 : vector<1x64xf32> to vector<8x64xf32>
    %68 = arith.mulf %65, %67 : vector<8x64xf32>
    %cst_58 = arith.constant dense<0.000000e+00> : vector<8xf32>
    %69 = vector.multi_reduction <add>, %68, %cst_58 [1] : vector<8x64xf32> to vector<8xf32>
    %70 = vector.shape_cast %69 : vector<8xf32> to vector<8x1xf32>
    %c0_59 = arith.constant 0 : index
    %c0_60 = arith.constant 0 : index
    %71 = vector.load %arg23[%c0_59, %c0_60] : memref<1x1xf32, #tpu.memory_space<vmem>>, vector<1x1xf32>
    %72 = vector.broadcast %71 : vector<1x1xf32> to vector<8x1xf32>
    %73 = arith.addf %70, %72 : vector<8x1xf32>
    %c0_61 = arith.constant 0 : index
    %c0_62 = arith.constant 0 : index
    %74 = vector.load %arg24[%c0_61, %c0_62] : memref<8x1xf32, #tpu.memory_space<vmem>>, vector<8x1xf32>
    tpu.vector_store %arg24[%c0_61, %c0_62], %73 {strides = array<i32>} : memref<8x1xf32, #tpu.memory_space<vmem>>, vector<8x1xf32>,
    return
  }
  func.func @transform_0(%arg0: i32) -> (i32, i32) {
    %c0_i32 = arith.constant 0 : i32
    %c0_i32_0 = arith.constant 0 : i32
    return %arg0, %c0_i32 : i32, i32
  }
  func.func @transform_1(%arg0: i32) -> (i32, i32) {
    %c0_i32 = arith.constant 0 : i32
    %c0_i32_0 = arith.constant 0 : i32
    return %arg0, %c0_i32 : i32, i32
  }
  func.func @transform_2(%arg0: i32) -> (i32, i32) {
    %c0_i32 = arith.constant 0 : i32
    %c0_i32_0 = arith.constant 0 : i32
    %c0_i32_1 = arith.constant 0 : i32
    return %c0_i32, %c0_i32_0 : i32, i32
  }
  func.func @transform_3(%arg0: i32) -> (i32, i32) {
    %c0_i32 = arith.constant 0 : i32
    %c0_i32_0 = arith.constant 0 : i32
    %c0_i32_1 = arith.constant 0 : i32
    return %c0_i32, %c0_i32_0 : i32, i32
  }
  func.func @transform_4(%arg0: i32) -> (i32, i32) {
    %c0_i32 = arith.constant 0 : i32
    %c0_i32_0 = arith.constant 0 : i32
    %c0_i32_1 = arith.constant 0 : i32
    return %c0_i32, %c0_i32_0 : i32, i32
  }
  func.func @transform_5(%arg0: i32) -> (i32, i32) {
    %c0_i32 = arith.constant 0 : i32
    %c0_i32_0 = arith.constant 0 : i32
    %c0_i32_1 = arith.constant 0 : i32
    return %c0_i32, %c0_i32_0 : i32, i32
  }
  func.func @transform_6(%arg0: i32) -> (i32, i32) {
    %c0_i32 = arith.constant 0 : i32
    %c0_i32_0 = arith.constant 0 : i32
    %c0_i32_1 = arith.constant 0 : i32
    return %c0_i32, %c0_i32_0 : i32, i32
  }
  func.func @transform_7(%arg0: i32) -> (i32, i32) {
    %c0_i32 = arith.constant 0 : i32
    %c0_i32_0 = arith.constant 0 : i32
    %c0_i32_1 = arith.constant 0 : i32
    return %c0_i32, %c0_i32_0 : i32, i32
  }
  func.func @transform_8(%arg0: i32) -> (i32, i32) {
    %c0_i32 = arith.constant 0 : i32
    %c0_i32_0 = arith.constant 0 : i32
    %c0_i32_1 = arith.constant 0 : i32
    return %c0_i32, %c0_i32_0 : i32, i32
  }
  func.func @transform_9(%arg0: i32) -> (i32, i32) {
    %c0_i32 = arith.constant 0 : i32
    %c0_i32_0 = arith.constant 0 : i32
    %c0_i32_1 = arith.constant 0 : i32
    return %c0_i32, %c0_i32_0 : i32, i32
  }
  func.func @transform_10(%arg0: i32) -> (i32, i32) {
    %c0_i32 = arith.constant 0 : i32
    %c0_i32_0 = arith.constant 0 : i32
    %c0_i32_1 = arith.constant 0 : i32
    return %c0_i32, %c0_i32_0 : i32, i32
  }
  func.func @transform_11(%arg0: i32) -> (i32, i32) {
    %c0_i32 = arith.constant 0 : i32
    %c0_i32_0 = arith.constant 0 : i32
    %c0_i32_1 = arith.constant 0 : i32
    return %c0_i32, %c0_i32_0 : i32, i32
  }
  func.func @transform_12(%arg0: i32) -> (i32, i32) {
    %c0_i32 = arith.constant 0 : i32
    %c0_i32_0 = arith.constant 0 : i32
    %c0_i32_1 = arith.constant 0 : i32
    return %c0_i32, %c0_i32_0 : i32, i32
  }
  func.func @transform_13(%arg0: i32) -> (i32, i32) {
    %c0_i32 = arith.constant 0 : i32
    %c0_i32_0 = arith.constant 0 : i32
    %c0_i32_1 = arith.constant 0 : i32
    return %c0_i32, %c0_i32_0 : i32, i32
  }
  func.func @transform_14(%arg0: i32) -> (i32, i32) {
    %c0_i32 = arith.constant 0 : i32
    %c0_i32_0 = arith.constant 0 : i32
    %c0_i32_1 = arith.constant 0 : i32
    return %c0_i32, %c0_i32_0 : i32, i32
  }
  func.func @transform_15(%arg0: i32) -> (i32, i32) {
    %c0_i32 = arith.constant 0 : i32
    %c0_i32_0 = arith.constant 0 : i32
    %c0_i32_1 = arith.constant 0 : i32
    return %c0_i32, %c0_i32_0 : i32, i32
  }
  func.func @transform_16(%arg0: i32) -> (i32, i32) {
    %c0_i32 = arith.constant 0 : i32
    %c0_i32_0 = arith.constant 0 : i32
    %c0_i32_1 = arith.constant 0 : i32
    return %c0_i32, %c0_i32_0 : i32, i32
  }
  func.func @transform_17(%arg0: i32) -> (i32, i32) {
    %c0_i32 = arith.constant 0 : i32
    %c0_i32_0 = arith.constant 0 : i32
    %c0_i32_1 = arith.constant 0 : i32
    return %c0_i32, %c0_i32_0 : i32, i32
  }
  func.func @transform_18(%arg0: i32) -> (i32, i32) {
    %c0_i32 = arith.constant 0 : i32
    %c0_i32_0 = arith.constant 0 : i32
    %c0_i32_1 = arith.constant 0 : i32
    return %c0_i32, %c0_i32_0 : i32, i32
  }
  func.func @transform_19(%arg0: i32) -> (i32, i32) {
    %c0_i32 = arith.constant 0 : i32
    %c0_i32_0 = arith.constant 0 : i32
    %c0_i32_1 = arith.constant 0 : i32
    return %c0_i32, %c0_i32_0 : i32, i32
  }
  func.func @transform_20(%arg0: i32) -> (i32, i32) {
    %c0_i32 = arith.constant 0 : i32
    %c0_i32_0 = arith.constant 0 : i32
    %c0_i32_1 = arith.constant 0 : i32
    return %c0_i32, %c0_i32_0 : i32, i32
  }
  func.func @transform_21(%arg0: i32) -> (i32, i32) {
    %c0_i32 = arith.constant 0 : i32
    %c0_i32_0 = arith.constant 0 : i32
    %c0_i32_1 = arith.constant 0 : i32
    return %c0_i32, %c0_i32_0 : i32, i32
  }
  func.func @transform_22(%arg0: i32) -> (i32, i32) {
    %c0_i32 = arith.constant 0 : i32
    %c0_i32_0 = arith.constant 0 : i32
    %c0_i32_1 = arith.constant 0 : i32
    return %c0_i32, %c0_i32_0 : i32, i32
  }
  func.func @transform_23(%arg0: i32) -> (i32, i32) {
    %c0_i32 = arith.constant 0 : i32
    %c0_i32_0 = arith.constant 0 : i32
    return %arg0, %c0_i32 : i32, i32
  }
}

</mosaic_0001>

<bundles_post_ra>
// kernel: book_trade_net_forward.1
= control target key start
LH: loop header
LB: loop body
LE: loop exit
PB: predicated region body
PF: predicated region fallthrough
CT: control target
= control target key end

     0   :  { %v1293_v0 = vmov 0.0|0.0   ;;  %vm1294_vm0 = vmmov 0   ;;  %v1295_v4 = vmov 0.0   ;;  %vm88_vm1 = vcmask 261120   ;;  %s1688_s2 = inlined_call_operand.vmem [shape: f32[32,64], index: 2, kind: input, shape index: {}]   ;;  %s1689_s4 = inlined_call_operand.vmem [shape: f32[64,64], index: 4, kind: input, shape index: {}]   ;;  %s1690_s0 = inlined_call_operand.vmem [shape: f32[8,32], index: 0, kind: input, shape index: {}]   ;;  %s1691_s6 = inlined_call_operand.vmem [shape: f32[64,32], index: 6, kind: input, shape index: {}]   ;;  %s1692_s3 = inlined_call_operand.vmem [shape: f32[1,64], index: 3, kind: input, shape index: {}]   ;;  %s1693_s8 = inlined_call_operand.vmem [shape: f32[32,64], index: 8, kind: input, shape index: {}]   ;;  %s1694_s1 = inlined_call_operand.vmem [shape: f32[8,32], index: 1, kind: input, shape index: {}]   ;;  %s1695_s5 = inlined_call_operand.vmem [shape: f32[1,64], index: 5, kind: input, shape index: {}]   ;;  %s1696_s10 = inlined_call_operand.vmem [shape: f32[64,64], index: 10, kind: input, shape index: {}]   ;;  %s1697_s9 = inlined_call_operand.vmem [shape: f32[1,64], index: 9, kind: input, shape index: {}]   ;;  %s1698_s12 = inlined_call_operand.vmem [shape: f32[64,32], index: 12, kind: input, shape index: {}]   ;;  %s1699_s15 = inlined_call_operand.vmem [shape: f32[32,64], index: 15, kind: input, shape index: {}]   ;;  %s1700_s11 = inlined_call_operand.vmem [shape: f32[1,64], index: 11, kind: input, shape index: {}]   ;;  %s1701_s14 = inlined_call_operand.vmem [shape: f32[32,64], index: 14, kind: input, shape index: {}]   ;;  %s1702_s7 = inlined_call_operand.vmem [shape: f32[1,32], index: 7, kind: input, shape index: {}]   ;;  %s1703_s17 = inlined_call_operand.vmem [shape: f32[64,8], index: 17, kind: input, shape index: {}]   ;;  %s1704_s13 = inlined_call_operand.vmem [shape: f32[1,32], index: 13, kind: input, shape index: {}]   ;;  %s1705_s16 = inlined_call_operand.vmem [shape: f32[1,64], index: 16, kind: input, shape index: {}]   ;;  %s1706_s19 = inlined_call_operand.vmem [shape: f32[8,64], index: 19, kind: input, shape index: {}]   ;;  %s1707_s18 = inlined_call_operand.vmem [shape: f32[1,8], index: 18, kind: input, shape index: {}]   ;;  %s1708_s22 = inlined_call_operand.<no memory space> [shape: f32[1,1], index: 22, kind: input, shape index: {}]   ;;  %s1709_s20 = inlined_call_operand.vmem [shape: f32[1,64], index: 20, kind: input, shape index: {}]   ;;  %s1710_s21 = inlined_call_operand.vmem [shape: f32[1,64], index: 21, kind: input, shape index: {}]   ;;  %s1711_s23 = inlined_call_operand.vmem [shape: f32[8,1], index: 23, kind: output, shape index: {}]  }
   0x1   :  { %1716 = sst [smem:[#allocation3_spill]] %s1688_s2  ;;  %1202 = vmatprep.subr.bf16.mxu1 %v1293_v0  ;;  %1066 = vmatprep.mubr.msk.f32.mxu1 %vm1294_vm0, %v1295_v4  ;;  %vm178_vm2 = vcmask 523264   ;;  %v427_v46 = vld [vmem:[%s1696_s10] sm:$0xff]  ;;  %v428_v47 = vld [vmem:[%s1696_s10 + $0x8] sm:$0xff]  ;;  %v429_v53 = vld [vmem:[%s1696_s10 + $0x10] sm:$0xff]  ;;  %vm863_vm3 = vcmask 64512  }
   0x2   :  { %1717 = sst [smem:[#allocation4_spill]] %s1689_s4  ;;  %s1724_s24 = sld [smem:[#allocation3_spill]]  ;;  %1220 = vmatprep.subr.bf16.mxu0 %v1293_v0  ;;  %1104 = vmatprep.mubr.msk.f32.mxu0 %vm1294_vm0, %v1295_v4  ;;  %v1239_v51 = vpack.c.bf16 %v428_v47, %v427_v46  ;;  %v430_v54 = vld [vmem:[%s1696_s10 + $0x18] sm:$0xff]  ;;  %v431_v56 = vld [vmem:[%s1696_s10 + $0x20] sm:$0xff]  ;;  %v432_v57 = vld [vmem:[%s1696_s10 + $0x28] sm:$0xff]  ;;  %vm963_vm4 = vcmask 7168  }
   0x3   :  { %1718 = sst [smem:[#allocation5_spill]] %s1690_s0  ;;  %s1725_s28 = sld [smem:[#allocation4_spill]]  ;;  %v1242_v55 = vpack.c.bf16 %v430_v54, %v429_v53  ;;  %v1245_v60 = vpack.c.bf16 %v432_v57, %v431_v56  ;;  %v975_v61 = vld [vmem:[%s1697_s9] ss:$0 sm:$0xff]  ;;  %v433_v62 = vld [vmem:[%s1696_s10 + $0x30] sm:$0xff]  ;;  %v434_v63 = vld [vmem:[%s1696_s10 + $0x38] sm:$0xff] }
   0x4   :  { %1719 = sst [smem:[#allocation6_spill]] %s1691_s6  ;;  %s1726_s30 = sld [smem:[#allocation5_spill]]  ;;  %v769_v46 = vld [vmem:[%s1703_s17 + $0x18] sm:$0xff]  ;;  %v983_v56 = vld [vmem:[%s1705_s16] ss:$0 sm:$0xff] }
   0x5   :  { %1720 = sst [smem:[#allocation7_spill]] %s1692_s3  ;;  %v773_v53 = vld [vmem:[%s1703_s17 + $0x38] sm:$0xff] }
   0x6   :  { %1721 = sst [smem:[#allocation8_spill]] %s1693_s8  ;;  %s1728_s3 = sld [smem:[#allocation7_spill]] }
   0x7   :  { %1722 = sst [smem:[#allocation9_spill]] %s1694_s1  ;;  %s1729_s8 = sld [smem:[#allocation8_spill]] }
   0x8   :  { %1723 = sst [smem:[#allocation10_spill]] %s1695_s5  ;;  %v77_v1 = vld [vmem:[%s1724_s24] sm:$0xff]  ;;  %v78_v2 = vld [vmem:[%s1724_s24 + $0x8] sm:$0xff]  ;;  %v79_v3 = vld [vmem:[%s1724_s24 + $0x10] sm:$0xff]  ;;  %s1730_s6 = sld [smem:[#allocation9_spill]] }
   0x9   :  { %v1203_v5 = vpack.c.bf16 %v78_v2, %v77_v1  ;;  %v80_v6 = vld [vmem:[%s1724_s24 + $0x18] sm:$0xff]  ;;  %v163_v8 = vld [vmem:[%s1725_s28] sm:$0xff]  ;;  %v164_v9 = vld [vmem:[%s1725_s28 + $0x8] sm:$0xff]  ;;  %s1727_s24 = sld [smem:[#allocation6_spill]]  ;;  %s1731_s26 = sld [smem:[#allocation10_spill]]  ;;  %v1248_v2 = vpack.c.bf16 %v434_v63, %v433_v62 }
   0xa   :  { %v1206_v7 = vpack.c.bf16 %v80_v6, %v79_v3  ;;  %v76_v10 = vld [vmem:[%s1726_s30] sm:$0xff]  ;;  %v1209_v11 = vpack.c.bf16 %v164_v9, %v163_v8  ;;  %v165_v12 = vld [vmem:[%s1725_s28 + $0x10] sm:$0xff]  ;;  %v166_v13 = vld [vmem:[%s1725_s28 + $0x18] sm:$0xff] }
   0xb   :  { %1204 = vmatpush3.bf16.msra.mxu1 %v1203_v5  ;;  %v1212_v14 = vpack.c.bf16 %v166_v13, %v165_v12  ;;  %v167_v15 = vld [vmem:[%s1725_s28 + $0x20] sm:$0xff]  ;;  %v168_v16 = vld [vmem:[%s1725_s28 + $0x28] sm:$0xff]  ;;  %v169_v18 = vld [vmem:[%s1725_s28 + $0x30] sm:$0xff] }
   0xc   :  { %1205 = vmatprep.subr.bf16.mxu1 %v1293_v0  ;;  %v1215_v17 = vpack.c.bf16 %v168_v16, %v167_v15  ;;  %v170_v19 = vld [vmem:[%s1725_s28 + $0x38] sm:$0xff]  ;;  %v969_v30 = vld [vmem:[%s1728_s3] ss:$0 sm:$0xff]  ;;  %v517_v6 = vld [vmem:[%s1698_s12 + $0x8] sm:$0xff] }
   0xd   :  { %v1218_v20 = vpack.c.bf16 %v170_v19, %v169_v18  ;;  %v342_v31 = vld [vmem:[%s1729_s8] sm:$0xff]  ;;  %v343_v32 = vld [vmem:[%s1729_s8 + $0x8] sm:$0xff]  ;;  %v344_v38 = vld [vmem:[%s1729_s8 + $0x10] sm:$0xff] }
   0xe   :  { %v1233_v36 = vpack.c.bf16 %v343_v32, %v342_v31  ;;  %v345_v39 = vld [vmem:[%s1729_s8 + $0x18] sm:$0xff]  ;;  %v341_v41 = vld [vmem:[%s1730_s6] sm:$0xff]  ;;  %v521_v12 = vld [vmem:[%s1698_s12 + $0x28] sm:$0xff] }
   0xf   :  { %1207 = vmatpush3.bf16.msra.mxu1 %v1206_v7  ;;  %v253_v21 = vld [vmem:[%s1727_s24] sm:$0xff]  ;;  %v254_v22 = vld [vmem:[%s1727_s24 + $0x8] sm:$0xff]  ;;  %v255_v23 = vld [vmem:[%s1727_s24 + $0x10] sm:$0xff]  ;;  %v1236_v40 = vpack.c.bf16 %v345_v39, %v344_v38 }
  0x10   :  { %1208 = vmatprep.subr.bf16.mxu1 %v1293_v0  ;;  %v1221_v24 = vpack.c.bf16 %v254_v22, %v253_v21  ;;  %v256_v25 = vld [vmem:[%s1727_s24 + $0x18] sm:$0xff]  ;;  %v257_v27 = vld [vmem:[%s1727_s24 + $0x20] sm:$0xff]  ;;  %v258_v28 = vld [vmem:[%s1727_s24 + $0x28] sm:$0xff] }
  0x11   :  { %v1224_v26 = vpack.c.bf16 %v256_v25, %v255_v23  ;;  %v1227_v29 = vpack.c.bf16 %v258_v28, %v257_v27  ;;  %v259_v42 = vld [vmem:[%s1727_s24 + $0x30] sm:$0xff]  ;;  %v260_v43 = vld [vmem:[%s1727_s24 + $0x38] sm:$0xff]  ;;  %v971_v45 = vld [vmem:[%s1731_s26] ss:$0 sm:$0xff] }
  0x12   :  { %1067 = vmatmul.mubr.msk.f32.vlgmr.msra.gmra.mrb[0].mxu1 %vm88_vm1, %v76_v10  ;;  %1222 = vmatpush3.bf16.msra.mxu0 %v1221_v24  ;;  %v1230_v44 = vpack.c.bf16 %v260_v43, %v259_v42  ;;  %v516_v5 = vld [vmem:[%s1698_s12] sm:$0xff]  ;;  %v518_v7 = vld [vmem:[%s1698_s12 + $0x10] sm:$0xff]  ;;  %v519_v9 = vld [vmem:[%s1698_s12 + $0x18] sm:$0xff] }
  0x13   :  { %1210 = vmatpush3.bf16.msra.mxu1 %v1209_v11  ;;  %1085 = vmatprep.mubr.msk.f32.mxu1 %vm1294_vm0, %v1295_v4  ;;  %v1251_v8 = vpack.c.bf16 %v517_v6, %v516_v5  ;;  %v1254_v10 = vpack.c.bf16 %v519_v9, %v518_v7  ;;  %v520_v11 = vld [vmem:[%s1698_s12 + $0x20] sm:$0xff]  ;;  %v523_v15 = vld [vmem:[%s1698_s12 + $0x38] sm:$0xff]  ;;  %v609_v18 = vld [vmem:[%s1699_s15 + $0x8] sm:$0xff] }
  0x14   :  { %1211 = vmatprep.subr.bf16.mxu1 %v1293_v0  ;;  %1223 = vmatprep.subr.bf16.mxu0 %v1293_v0  ;;  %v1257_v13 = vpack.c.bf16 %v521_v12, %v520_v11  ;;  %v977_v22 = vld [vmem:[%s1700_s11] ss:$0 sm:$0xff]  ;;  %v605_v24 = vld [vmem:[%s1701_s14 + $0x8] sm:$0xff]  ;;  %v607_v31 = vld [vmem:[%s1701_s14 + $0x18] sm:$0xff] }
  0x15   :  { %v604_v23 = vld [vmem:[%s1701_s14] sm:$0xff]  ;;  %v767_v39 = vld [vmem:[%s1703_s17 + $0x8] sm:$0xff] }
  0x16   :  { %1225 = vmatpush3.bf16.msra.mxu0 %v1224_v26  ;;  %v1269_v28 = vpack.c.bf16 %v605_v24, %v604_v23  ;;  %v766_v38 = vld [vmem:[%s1703_s17] sm:$0xff] }
  0x17   :  { %1213 = vmatpush3.bf16.msra.mxu1 %v1212_v14  ;;  %1226 = vmatprep.subr.bf16.mxu0 %v1293_v0  ;;  %v522_v14 = vld [vmem:[%s1698_s12 + $0x30] sm:$0xff]  ;;  %v1275_v42 = vpack.c.bf16 %v767_v39, %v766_v38  ;;  %v989_v12 = vld [vmem:[%s1710_s21] ss:$0 sm:$0xff] }
  0x18   :  { %1214 = vmatprep.subr.bf16.mxu1 %v1293_v0  ;;  %v1260_v16 = vpack.c.bf16 %v523_v15, %v522_v14 }
  0x1a   :  { %1228 = vmatpush3.bf16.msra.mxu0 %v1227_v29 }
  0x1b   :  { %1216 = vmatpush3.bf16.msra.mxu1 %v1215_v17  ;;  %1229 = vmatprep.subr.bf16.mxu0 %v1293_v0  ;;  %v608_v17 = vld [vmem:[%s1699_s15] sm:$0xff] }
  0x1c   :  { %1217 = vmatprep.subr.bf16.mxu1 %v1293_v0  ;;  %v1263_v19 = vpack.c.bf16 %v609_v18, %v608_v17 }
  0x1e   :  { %1231 = vmatpush3.bf16.msra.mxu0 %v1230_v44 }
  0x1f   :  { %1219 = vmatpush3.bf16.msra.mxu1 %v1218_v20  ;;  %1238 = vmatprep.subr.bf16.mxu0 %v1293_v0 }
  0x20   :  { %1232 = vmatprep.subr.bf16.mxu1 %v1293_v0 }
  0xe5   :  { %v158_v33 = vpop.f32.mrb[0].mxu1 }
  0xe6   :  { %v159_v34 = vadd.f32 %v969_v30, %v158_v33  ;;  %v1068_v35 = vpop.f32.mrb[1].mxu1  ;;  %v606_v30 = vld [vmem:[%s1701_s14 + $0x10] sm:$0xff]  ;;  %v973_v33 = vld [vmem:[%s1702_s7] ss:$0 sm:$0xff] }
  0xe7   :  { %v1272_v32 = vpack.c.bf16 %v607_v31, %v606_v30  ;;  %v610_v35 = vld [vmem:[%s1699_s15 + $0x10] sm:$0xff] }
  0xe8   :  { %v162_v37 = vmax.f32 %v159_v34, 0.0 }
  0xea   :  { %1086 = vmatmul.mubr.msk.f32.vlgmr.msra.gmra.mrb[2].mxu1 %vm178_vm2, %v162_v37 }
  0xeb   :  { %1234 = vmatpush3.bf16.msra.mxu1 %v1233_v36  ;;  %1115 = vmatprep.mubr.msk.f32.mxu1 %vm1294_vm0, %v1295_v4  ;;  %v611_v36 = vld [vmem:[%s1699_s15 + $0x18] sm:$0xff] }
  0xec   :  { %1235 = vmatprep.subr.bf16.mxu1 %v1293_v0  ;;  %v1266_v37 = vpack.c.bf16 %v611_v36, %v610_v35 }
  0xef   :  { %1237 = vmatpush3.bf16.msra.mxu1 %v1236_v40  ;;  %v979_v40 = vld [vmem:[%s1704_s13] ss:$0 sm:$0xff] }
  0xf0   :  { %1250 = vmatprep.subr.bf16.mxu1 %v1293_v0 }
  0xf2   :  { %1116 = vmatmul.mubr.msk.f32.vlgmr.msra.gmra.mrb[4].mxu1 %vm88_vm1, %v341_v41 }
  0xf3   :  { %1153 = vmatprep.mubr.msk.f32.mxu1 %vm1294_vm0, %v1295_v4  ;;  %1252 = vmatpush3.bf16.msra.mxu1 %v1251_v8 }
  0xf4   :  { %1253 = vmatprep.subr.bf16.mxu1 %v1293_v0 }
  0xf7   :  { %1255 = vmatpush3.bf16.msra.mxu1 %v1254_v10 }
  0xf8   :  { %1256 = vmatprep.subr.bf16.mxu1 %v1293_v0 }
  0xfb   :  { %1258 = vmatpush3.bf16.msra.mxu1 %v1257_v13 }
  0xfc   :  { %1259 = vmatprep.subr.bf16.mxu1 %v1293_v0 }
  0xff   :  { %1261 = vmatpush3.bf16.msra.mxu1 %v1260_v16 }
 0x100   :  { %1268 = vmatprep.subr.bf16.mxu1 %v1293_v0 }
 0x1bd   :  { %v248_v48 = vpop.f32.mrb[2].mxu1 }
 0x1be   :  { %v249_v49 = vadd.f32 %v971_v45, %v248_v48  ;;  %v1087_v50 = vpop.f32.mrb[3].mxu1  ;;  %v768_v45 = vld [vmem:[%s1703_s17 + $0x10] sm:$0xff]  ;;  %v770_v48 = vld [vmem:[%s1703_s17 + $0x20] sm:$0xff] }
 0x1bf   :  { %v1278_v47 = vpack.c.bf16 %v769_v46, %v768_v45 }
 0x1c0   :  { %v252_v52 = vmax.f32 %v249_v49, 0.0  ;;  %v771_v49 = vld [vmem:[%s1703_s17 + $0x28] sm:$0xff] }
 0x1c2   :  { %1105 = vmatmul.mubr.msk.f32.vlgmr.msra.gmra.mrb[0].mxu0 %vm178_vm2, %v252_v52 }
 0x1c3   :  { %1240 = vmatpush3.bf16.msra.mxu0 %v1239_v51  ;;  %1134 = vmatprep.mubr.msk.f32.mxu0 %vm1294_vm0, %v1295_v4  ;;  %v1281_v51 = vpack.c.bf16 %v771_v49, %v770_v48 }
 0x1c4   :  { %1241 = vmatprep.subr.bf16.mxu0 %v1293_v0 }
 0x1c5   :  { %v422_v58 = vpop.f32.mrb[4].mxu1 }
 0x1c6   :  { %v1117_v59 = vpop.f32.mrb[5].mxu1  ;;  %v423_v1 = vadd.f32 %v975_v61, %v422_v58 }
 0x1c7   :  { %1243 = vmatpush3.bf16.msra.mxu0 %v1242_v55 }
 0x1c8   :  { %1244 = vmatprep.subr.bf16.mxu0 %v1293_v0  ;;  %v426_v3 = vmax.f32 %v423_v1, 0.0 }
 0x1cb   :  { %1246 = vmatpush3.bf16.msra.mxu0 %v1245_v60  ;;  %v984_v60 = vld [vmem:[%s1707_s18] ss:$0 sm:$0xff] }
 0x1cc   :  { %1247 = vmatprep.subr.bf16.mxu0 %v1293_v0 }
 0x1cf   :  { %1249 = vmatpush3.bf16.msra.mxu0 %v1248_v2  ;;  %v28_v2 = vstv %s1708_s22 }
 0x1d0   :  { %1262 = vmatprep.subr.bf16.mxu0 %v1293_v0  ;;  %29 = vst [vmem:[#allocation2] sm:$0x1] %v28_v2 }
 0x1d2   :  { %1135 = vmatmul.mubr.msk.f32.vlgmr.msra.gmra.mrb[2].mxu0 %vm178_vm2, %v426_v3  ;;  %v986_v3 = vld [vmem:[%s1709_s20] ss:$0 sm:$0xff] }
 0x1d3   :  { %1164 = vmatprep.mubr.msk.f32.mxu0 %vm1294_vm0, %v1295_v4  ;;  %1264 = vmatpush3.bf16.msra.mxu0 %v1263_v19 }
 0x1d4   :  { %1265 = vmatprep.subr.bf16.mxu0 %v1293_v0 }
 0x1d7   :  { %1267 = vmatpush3.bf16.msra.mxu0 %v1266_v37  ;;  %v990_v16 = vld [vmem:[#allocation2] ss:$0 sm:$0xff] }
 0x1d8   :  { %1274 = vmatprep.subr.bf16.mxu0 %v1293_v0 }
 0x295   :  { %v337_v20 = vpop.f32.mrb[0].mxu0 }
 0x296   :  { %v1106_v21 = vpop.f32.mrb[1].mxu0  ;;  %v338_v34 = vadd.f32 %v973_v33, %v337_v20 }
 0x2a5   :  { %v511_v25 = vpop.f32.mrb[2].mxu0 }
 0x2a6   :  { %v512_v26 = vadd.f32 %v977_v22, %v511_v25  ;;  %v1136_v27 = vpop.f32.mrb[3].mxu0 }
 0x2a8   :  { %v515_v29 = vmax.f32 %v512_v26, 0.0 }
 0x2aa   :  { %1154 = vmatmul.mubr.msk.f32.vlgmr.msra.gmra.mrb[6].mxu1 %vm178_vm2, %v515_v29 }
 0x2ab   :  { %1270 = vmatpush3.bf16.msra.mxu1 %v1269_v28  ;;  %1175 = vmatprep.mubr.msk.f32.mxu1 %vm1294_vm0, %v1295_v4 }
 0x2ac   :  { %1271 = vmatprep.subr.bf16.mxu1 %v1293_v0 }
 0x2af   :  { %1273 = vmatpush3.bf16.msra.mxu1 %v1272_v32 }
 0x2b0   :  { %1197 = vmatprep.subr.mxu1 %v1295_v4 }
 0x2b2   :  { %1176 = vmatmul.mubr.msk.f32.vlgmr.msra.gmra.mrb[8].mxu1 %vm88_vm1, %v338_v34 }
 0x2b3   :  { %1199 = vmatprep.mubr.msk.f32.mxu1 %vm1294_vm0, %v1295_v4 }
 0x37d   :  { %v600_v41 = vpop.f32.mrb[6].mxu1 }
 0x37e   :  { %v601_v43 = vadd.f32 %v979_v40, %v600_v41  ;;  %v1155_v44 = vpop.f32.mrb[7].mxu1 }
 0x380   :  { %1165 = vmatmul.mubr.msk.f32.vlgmr.msra.gmra.mrb[4].mxu0 %vm88_vm1, %v601_v43 }
 0x381   :  { %1276 = vmatpush3.bf16.msra.mxu0 %v1275_v42  ;;  %1194 = vmatprep.mubr.msk.f32.mxu0 %vm1294_vm0, %v1295_v4  ;;  %v772_v4 = vld [vmem:[%s1703_s17 + $0x30] sm:$0xff] }
 0x382   :  { %1277 = vmatprep.subr.bf16.mxu0 %v1293_v0  ;;  %v1284_v54 = vpack.c.bf16 %v773_v53, %v772_v4 }
 0x385   :  { %v754_v50 = vpop.f32.mrb[8].mxu1  ;;  %1279 = vmatpush3.bf16.msra.mxu0 %v1278_v47 }
 0x386   :  { %v1177_v52 = vpop.f32.mrb[9].mxu1  ;;  %1280 = vmatprep.subr.bf16.mxu0 %v1293_v0 }
 0x389   :  { %1282 = vmatpush3.bf16.msra.mxu0 %v1281_v51 }
 0x38a   :  { %1283 = vmatprep.subr.bf16.mxu0 %v1293_v0  ;;  %v855_v0 = vld [vmem:[%s1706_s19] sm:$0xff] }
 0x38b   :  { %1198 = vmatpush3.msra.mxu1 %v855_v0 }
 0x38d   :  { %1285 = vmatpush3.bf16.msra.mxu0 %v1284_v54 }
 0x453   :  { %v681_v55 = vpop.f32.mrb[4].mxu0 }
 0x454   :  { %v755_v57 = vadd.f32 %v754_v50, %v681_v55  ;;  %v1166_v58 = vpop.f32.mrb[5].mxu0 }
 0x456   :  { %v765_v59 = vadd.f32 %v983_v56, %v755_v57 }
 0x458   :  { %1195 = vmatmul.mubr.msk.f32.vlgmr.msra.gmra.mrb[6].mxu0 %vm178_vm2, %v765_v59 }
 0x52b   :  { %v850_v61 = vpop.f32.mrb[6].mxu0 }
 0x52c   :  { %v851_v62 = vadd.f32 %v984_v60, %v850_v61  ;;  %v1196_v63 = vpop.f32.mrb[7].mxu0 }
 0x52e   :  { %v854_v1 = vmax.f32 %v851_v62, 0.0 }
 0x530   :  { %1200 = vmatmul.mubr.msk.f32.vlgmr.msra.gmra.mrb[10].mxu1 %vm863_vm3, %v854_v1 }
 0x603   :  { %v933_v5 = vpop.f32.mrb[10].mxu1 }
 0x604   :  { %v934_v6 = vadd.f32 %v986_v3, %v933_v5  ;;  %v1201_v7 = vpop.f32.mrb[11].mxu1 }
 0x606   :  { %v988_v8 = vmul.f32 -1.442695, %v934_v6 }
 0x608   :  { %1289 = vpow2.f32 %v988_v8 }
 0x612   :  { %v1290_v9 = vpop.eup %1289 }
 0x613   :  { %v940_v10 = vadd.f32 1.0, %v1290_v9 }
 0x615   :  { %1291 = vrcp.f32 %v940_v10 }
 0x61f   :  { %v1292_v11 = vpop.eup %1291 }
 0x620   :  { %v943_v13 = vmul.f32 %v1292_v11, %v765_v59 }
 0x622   :  { %v951_v14 = vmul.f32 %v989_v12, %v943_v13 }
 0x624   :  { %v952_v15 = vsel %vm178_vm2, %v951_v14, 0.0 }
 0x625   :  { %953 = vadd.xlane.f32.xlu0 %v952_v15 }
 0x6b2   :  { %v954_v17 = vpop.xlane.xlu0 %953 }
 0x6b3   :  { %v962_v18 = vadd.f32 %v990_v16, %v954_v17 }
 0x6b5   :  { %964 = vst.msk [vmem:[%s1711_s23] sm:$0xff] %vm963_vm4, %v962_v18 }

</bundles_post_ra>
